<compile_context>
chip_gen: v6e
topology: v6e:2x2x1
jax: 0.10.0
libtpu: 0.0.40
codegen_flags: <defaults>
</compile_context>

<pallas_src>
import jax
import jax.numpy as jnp
from jax.experimental import pallas as pl
from jax.experimental.pallas import tpu as pltpu

N_BRANCHES = 5      # module default
K = 31              # avg_pool2d kernel size
PAD = 15            # avg_pool2d padding
N_MAPS = 4          # (map_5, map_4, map_3, map_2)


# ---------------------------------------------------------------------------
# Kernel 1: weit = 1 + 5 * |avg_pool2d_31(gt) - gt|, computed once per image.
# ---------------------------------------------------------------------------
def _weit_kernel(a_h_ref, a_w_ref, gt_ref, weit_ref):
    # a_h_ref : (H, H) bf16 0/1 band, |i-j| <= 15  (batch-invariant, resident)
    # a_w_ref : (W, W) bf16 0/1 band               (batch-invariant, resident)
    # gt_ref  : (H, W) f32 mask for one batch element (batch dim squeezed)
    # weit_ref: (H, W) f32 output
    t = gt_ref[...]

    # 31x31 box-sum as two bf16 MXU matmuls with f32 accumulation.
    # Out-of-range taps hit zero band entries == zero padding.
    pooled = jnp.dot(a_h_ref[...], t.astype(jnp.bfloat16),
                     preferred_element_type=jnp.float32)          # row pool
    pooled = jnp.dot(pooled.astype(jnp.bfloat16), a_w_ref[...],
                     preferred_element_type=jnp.float32)          # col pool
    pooled = pooled * (1.0 / (K * K))   # count_include_pad=True -> fixed 31*31

    weit_ref[...] = 1.0 + N_BRANCHES * jnp.abs(pooled - t)


# ---------------------------------------------------------------------------
# Kernel 2: per-map BCE / sigmoid + weighted reductions for all four maps.
# ---------------------------------------------------------------------------
def _loss_kernel(p5_ref, p4_ref, p3_ref, p2_ref, gt_ref, weit_ref, out_ref):
    # p*_ref  : (tb, chunk) logits (any float dtype; widened in-kernel)
    # gt_ref  : (tb, chunk) f32 mask
    # weit_ref: (tb, chunk) f32 weights
    # out_ref : (tb, 12) accumulator; cols [3m, 3m+1, 3m+2] = per-batch
    #           [sum_bce, inter, union] for map m (resident across hw chunks)
    h = pl.program_id(1)

    @pl.when(h == 0)
    def _():
        out_ref[...] = jnp.zeros_like(out_ref)

    t = gt_ref[...]
    w = weit_ref[...]
    tw = t * w                                    # shared across the 4 maps

    def map_stats(pred_ref):
        x = pred_ref[...].astype(jnp.float32)
        e = jnp.exp(-jnp.abs(x))                  # one EUP exp: BCE + sigmoid
        bce = jnp.maximum(x, 0.0) - x * t + jnp.log1p(e)
        d = 1.0 + e
        r = pl.reciprocal(d, approx=True)         # EUP rcp ...
        r = r * (2.0 - d * r)                     # ... + one Newton step
        p = jnp.where(x >= 0.0, r, e * r)         # sigmoid(x), stable
        sum_bce = jnp.sum(bce, axis=1, keepdims=True)       # (tb, 1)
        inter = jnp.sum(p * tw, axis=1, keepdims=True)       # (tb, 1)
        union = jnp.sum(p * w + tw, axis=1, keepdims=True)   # (tb, 1)
        return sum_bce, inter, union

    for m, pref in enumerate((p5_ref, p4_ref, p3_ref, p2_ref)):
        sb, si, su = map_stats(pref)
        c = 3 * m
        out_ref[:, c:c + 1] += sb
        out_ref[:, c + 1:c + 2] += si
        out_ref[:, c + 2:c + 3] += su


# ---------------------------------------------------------------------------
# Wrapper
# ---------------------------------------------------------------------------
def _band(n):
    idx = jnp.arange(n, dtype=jnp.int32)
    return (jnp.abs(idx[:, None] - idx[None, :]) <= PAD).astype(jnp.bfloat16)


def _pick_batch_tile(B):
    # Block sublane dim must be a multiple of 8 or equal the full dim.
    # tb=8 keeps >= 2 parallel batch iterations at production B (v7x megacore).
    return 8 if (B % 8 == 0) else B


def _pick_hw_chunk(HW, target=32 * 1024):
    # Largest chunk <= target that divides HW and is a multiple of 128
    # (lane-dense; keeps per-step double-buffered VMEM ~12 MiB at 352x352).
    if HW <= target or HW % 128 != 0:
        return HW
    units = HW // 128
    k = 1
    while units % k != 0 or (units // k) * 128 > target:
        k += 1
    return (units // k) * 128


def structure_loss(outputs, gt):
    """outputs = (map_5, map_4, map_3, map_2), each (B,1,H,W); gt: (B,H,W)."""
    map_5, map_4, map_3, map_2 = outputs
    gt = gt.astype(jnp.float32)
    B, H, W = gt.shape
    HW = H * W

    # ---- Kernel 1: weit, computed once (grid over batch, "parallel") ----
    a_h = _band(H)
    a_w = _band(W)
    weit = pl.pallas_call(
        _weit_kernel,
        out_shape=jax.ShapeDtypeStruct((B, H, W), jnp.float32),
        grid_spec=pltpu.PrefetchScalarGridSpec(
            num_scalar_prefetch=0,
            grid=(B,),
            in_specs=[
                pl.BlockSpec((H, H), lambda b: (0, 0)),            # resident
                pl.BlockSpec((W, W), lambda b: (0, 0)),            # resident
                pl.BlockSpec((pl.Squeezed(), H, W), lambda b: (b, 0, 0)),
            ],
            out_specs=pl.BlockSpec((pl.Squeezed(), H, W), lambda b: (b, 0, 0)),
        ),
        compiler_params=pltpu.CompilerParams(dimension_semantics=("parallel",)),
    )(a_h, a_w, gt)

    # ---- Kernel 2: BCE / sigmoid / weighted sums for all four maps ----
    # Free (bitcast) lane-dense views; logits keep their HBM dtype (no f32
    # upcast in HBM, no jnp.stack materialization).
    preds_f = [m.reshape(m.shape[0], -1) for m in (map_5, map_4, map_3, map_2)]
    gt_f = gt.reshape(B, HW)
    weit_f = weit.reshape(B, HW)

    tb = _pick_batch_tile(B)
    nbt = B // tb
    chunk = _pick_hw_chunk(HW)
    n_hw = HW // chunk

    tile_spec = pl.BlockSpec((tb, chunk), lambda b, h: (b, h))
    stats = pl.pallas_call(
        _loss_kernel,
        out_shape=jax.ShapeDtypeStruct((B, 3 * N_MAPS), jnp.float32),
        grid_spec=pltpu.PrefetchScalarGridSpec(
            num_scalar_prefetch=0,
            grid=(nbt, n_hw),             # hw innermost: accumulator resident
            in_specs=[tile_spec, tile_spec, tile_spec, tile_spec,   # 4 maps
                      tile_spec,                                    # gt
                      tile_spec],                                   # weit
            out_specs=pl.BlockSpec((tb, 3 * N_MAPS), lambda b, h: (b, 0)),
        ),
        compiler_params=pltpu.CompilerParams(
            dimension_semantics=("parallel", "arbitrary"),
            vmem_limit_bytes=48 * 1024 * 1024,
        ),
    )(*preds_f, gt_f, weit_f)

    stats = stats.reshape(B, N_MAPS, 3)
    sum_bce = stats[:, :, 0]          # (B, 4)
    inter = stats[:, :, 1]            # (B, 4)
    union = stats[:, :, 2]            # (B, 4)

    # Legacy `reduce='none'` -> reduction='mean' -> scalar wbce per map;
    # (weit * wbce).sum / weit.sum == wbce when wbce is a scalar.
    wbce = jnp.sum(sum_bce, axis=0) / (B * 1 * H * W)               # (4,)
    dice_loss = 1.0 - (2.0 * inter + 1.0) / (union + 1.0)           # (B, 4)
    # wiou is computed by the reference but never used in the returned loss.
    per_map_loss = wbce + jnp.mean(dice_loss, axis=0)               # (4,)

    loss_5, loss_4, loss_3, loss_2 = (per_map_loss[0], per_map_loss[1],
                                      per_map_loss[2], per_map_loss[3])
    final_loss = loss_5 + loss_4 + loss_3 + loss_2
    return final_loss, loss_2, loss_3, loss_4, loss_5


if __name__ == "__main__":
    key = jax.random.PRNGKey(0)
    B, H, W = 2, 16, 16
    k1, k2, k3, k4, k5 = jax.random.split(key, 5)
    map_5 = jax.random.normal(k1, (B, 1, H, W), jnp.float32)
    map_4 = jax.random.normal(k2, (B, 1, H, W), jnp.float32)
    map_3 = jax.random.normal(k3, (B, 1, H, W), jnp.float32)
    map_2 = jax.random.normal(k4, (B, 1, H, W), jnp.float32)
    gt = (jax.random.uniform(k5, (B, H, W)) > 0.5).astype(jnp.float32)

    outs = structure_loss((map_5, map_4, map_3, map_2), gt)
    jax.block_until_ready(outs)
    print("KERNEL_OK")
</pallas_src>

<mosaic_0001>
module attributes {stable_mosaic.version = 11 : i64} {
  func.func @_weit_kernel(%arg0: i32, %arg1: memref<16x16xbf16, #tpu.memory_space<vmem>>, %arg2: memref<16x16xbf16, #tpu.memory_space<vmem>>, %arg3: memref<1x16x16xf32, #tpu.memory_space<vmem>>, %arg4: memref<1x16x16xf32, #tpu.memory_space<vmem>>) attributes {dimension_semantics = [#tpu.dimension_semantics<parallel>], iteration_bounds = array<i64: 2>, scalar_prefetch = 0 : i64, scratch_operands = 0 : i64, tpu.core_type = #tpu.core_type<tc>, window_params = [{pipeline_mode = #tpu.pipeline_mode<synchronous>, transform_indices = @transform_0, window_bounds = array<i64: 16, 16>}, {pipeline_mode = #tpu.pipeline_mode<synchronous>, transform_indices = @transform_1, window_bounds = array<i64: 16, 16>}, {transform_indices = @transform_2, window_bounds = array<i64: 1, 16, 16>}, {transform_indices = @transform_3, window_bounds = array<i64: 1, 16, 16>}]} {
    %c0 = arith.constant 0 : index
    %c0_0 = arith.constant 0 : index
    %c0_1 = arith.constant 0 : index
    %0 = vector.load %arg3[%c0, %c0_0, %c0_1] : memref<1x16x16xf32, #tpu.memory_space<vmem>>, vector<1x16x16xf32>
    %1 = vector.shape_cast %0 : vector<1x16x16xf32> to vector<16x16xf32>
    %c0_2 = arith.constant 0 : index
    %c0_3 = arith.constant 0 : index
    %2 = vector.load %arg1[%c0_2, %c0_3] : memref<16x16xbf16, #tpu.memory_space<vmem>>, vector<16x16xbf16>
    %3 = arith.truncf %1 : vector<16x16xf32> to vector<16x16xbf16>
    %cst = arith.constant dense<0.000000e+00> : vector<16x16xf32>
    %4 = tpu.matmul %2, %3, %cst {dimension_numbers = #tpu.dot_dimension_numbers<[1], [0], [0], [1], [0, 0, 1, 1], [], []>} : vector<16x16xbf16>, vector<16x16xbf16>, vector<16x16xf32> -> vector<16x16xf32>
    %5 = arith.truncf %4 : vector<16x16xf32> to vector<16x16xbf16>
    %c0_4 = arith.constant 0 : index
    %c0_5 = arith.constant 0 : index
    %6 = vector.load %arg2[%c0_4, %c0_5] : memref<16x16xbf16, #tpu.memory_space<vmem>>, vector<16x16xbf16>
    %cst_6 = arith.constant dense<0.000000e+00> : vector<16x16xf32>
    %7 = tpu.matmul %5, %6, %cst_6 {dimension_numbers = #tpu.dot_dimension_numbers<[1], [0], [0], [1], [0, 0, 1, 1], [], []>} : vector<16x16xbf16>, vector<16x16xbf16>, vector<16x16xf32> -> vector<16x16xf32>
    %cst_7 = arith.constant 0.00104058278 : f32
    %8 = vector.broadcast %cst_7 : f32 to vector<16x16xf32>
    %9 = arith.mulf %7, %8 : vector<16x16xf32>
    %10 = arith.subf %9, %1 : vector<16x16xf32>
    %11 = math.absf %10 : vector<16x16xf32>
    %cst_8 = arith.constant 5.000000e+00 : f32
    %12 = vector.broadcast %cst_8 : f32 to vector<16x16xf32>
    %13 = arith.mulf %12, %11 : vector<16x16xf32>
    %cst_9 = arith.constant 1.000000e+00 : f32
    %14 = vector.broadcast %cst_9 : f32 to vector<16x16xf32>
    %15 = arith.addf %14, %13 : vector<16x16xf32>
    %c0_10 = arith.constant 0 : index
    %c0_11 = arith.constant 0 : index
    %c0_12 = arith.constant 0 : index
    %16 = vector.load %arg4[%c0_10, %c0_11, %c0_12] : memref<1x16x16xf32, #tpu.memory_space<vmem>>, vector<1x16x16xf32>
    %17 = vector.shape_cast %16 : vector<1x16x16xf32> to vector<16x16xf32>
    %18 = vector.shape_cast %15 : vector<16x16xf32> to vector<1x16x16xf32>
    tpu.vector_store %arg4[%c0_10, %c0_11, %c0_12], %18 {strides = array<i32>} : memref<1x16x16xf32, #tpu.memory_space<vmem>>, vector<1x16x16xf32>,
    return
  }
  func.func @transform_0(%arg0: i32) -> (i32, i32) {
    %c0_i32 = arith.constant 0 : i32
    %c0_i32_0 = arith.constant 0 : i32
    %c0_i32_1 = arith.constant 0 : i32
    return %c0_i32, %c0_i32_0 : i32, i32
  }
  func.func @transform_1(%arg0: i32) -> (i32, i32) {
    %c0_i32 = arith.constant 0 : i32
    %c0_i32_0 = arith.constant 0 : i32
    %c0_i32_1 = arith.constant 0 : i32
    return %c0_i32, %c0_i32_0 : i32, i32
  }
  func.func @transform_2(%arg0: i32) -> (i32, i32, i32) {
    %c0_i32 = arith.constant 0 : i32
    %c0_i32_0 = arith.constant 0 : i32
    %c0_i32_1 = arith.constant 0 : i32
    return %arg0, %c0_i32, %c0_i32_0 : i32, i32, i32
  }
  func.func @transform_3(%arg0: i32) -> (i32, i32, i32) {
    %c0_i32 = arith.constant 0 : i32
    %c0_i32_0 = arith.constant 0 : i32
    %c0_i32_1 = arith.constant 0 : i32
    return %arg0, %c0_i32, %c0_i32_0 : i32, i32, i32
  }
}

</mosaic_0001>

<bundles_post_ra>
// kernel: tpu_custom_call.1
= control target key start
LH: loop header
LB: loop body
LE: loop exit
PB: predicated region body
PF: predicated region fallthrough
CT: control target
= control target key end

     0   :  { %8 = vsyncpa [#allocation3], 0  ;;  %s954_s0 = inlined_call_operand.hbm [shape: bf16[16,16], index: 0, kind: input, shape index: {}]   ;;  %s955_s1 = inlined_call_operand.hbm [shape: bf16[16,16], index: 1, kind: input, shape index: {}]   ;;  %s956_s2 = inlined_call_operand.hbm [shape: f32[2,16,16], index: 2, kind: input, shape index: {}]   ;;  %s957_s3 = inlined_call_operand.hbm [shape: f32[2,16,16], index: 3, kind: output, shape index: {}]  }
   0x1   :  { %9 = vsyncpa [#allocation6], 0 }
   0x2   :  { %10 = vsyncpa [#allocation4], 0 }
   0x3   :  { %12 = vsyncpa [#allocation4 + $0x1], 0  ;;  %s746_s12 = smov 0   ;;  %s748_s13 = smov 0  }
   0x4   :  { %s750_s14 = smov 0   ;;  %s752_s15 = smov 0  }
   0x5 LB: > { %s767_s16 = sadd.s32 4294967295, %s712_s15   ;;  %s443_s17 = sadd.s32 4294967294, %s712_s15   ;;  %s712_s15 = sphi %s752_s15, %s981_s15   ;;  %s708_s14 = sphi %s750_s14, %s980_s14   ;;  %s704_s13 = sphi %s748_s13, %s979_s13   ;;  %s700_s12 = sphi %s746_s12, %s978_s12  }
   0x6   : > { %s771_s18 = sadd.s32 1, %s712_s15   ;;  %s67_s19 = sadd.s32 1, %s708_s14 }
   0x7   : > { %s64_s20 = ssub.s32 %s712_s15, %s771_s18  ;;  %p74_p0 = scmp.ne.s32.totalorder %s708_s14, %s704_s13 }
   0x8   : > { %p65_p1 = scmp.eq.s32.totalorder %s64_s20, 0  ;;  %p75_p2 = scmp.eq.s32.totalorder %s712_s15, 0 }
   0x9   : > { %p80_p3 = scmp.ne.s32.totalorder %s704_s13, %s700_s12  ;;  %p959_p4 = scmp.eq.s32.totalorder %s767_s16, 0 }
   0xa   : > { %s783_s21 = scalar_select %p65_p1, %s708_s14, %s67_s19  }
   0xb   : > { %p785_p5 = por %p75_p2, %p74_p0  ;;  %p791_p6 = por %p959_p4, %p80_p3 }
   0xc   : > { %p104_p7 = scmp.eq.s32.totalorder %s767_s16, 1  ;;  %p110_p8 = scmp.eq.s32.totalorder %s443_s17, 1 }
   0xd   : > { %s963_s23 = scalar_select %p791_p6, 1, 0 }
   0xe   : > { %p444_p9 = scmp.ge.s32.totalorder %s712_s15, 1  ;;  %p117_p10 = scmp.lt.s32.totalorder %s712_s15, 3 }
   0xf   : > { %p798_p11 = por %p104_p7, %p74_p0  ;;  %p802_p12 = por %p110_p8, %p80_p3 }
  0x10   : > { %p806_p13 = pnand %p444_p9, %p117_p10  ;;  %s714_s27 = smov [#allocation2]  }
  0x11   : > { %s964_s24 = scalar_select %p798_p11, 1, 0 }
  0x12   : > { %s965_s25 = scalar_select %p802_p12, 1, 0 }
  0x13   : > { %s966_s26 = scalar_select %p806_p13, 1, 0 }
  0x14   : > { %p495_p1 = pneg %p806_p13  ;;  %s129_s28 = sshll.u32 %s714_s27, 4  ;;  %s130_s28 = int_to_ptr.vmem [resolvable:$true] %s129_s28 }
  0x15   : > { %p512_p3 = scmp.lt.s32.totalorder %s712_s15, 2  ;;  %s715_s30 = smov [#allocation5]  }
  0x16   : > { %p814_p2 = pnand %p495_p1, %p959_p4  ;;  %s142_s4 = sshll.u32 %s715_s30, 4  ;;  %s143_s4 = int_to_ptr.vmem [resolvable:$true] %s142_s4 }
  0x17   : > { %s571_s5 = scalar_lea.vmem %s130_s28, 128  ;;  %p579_p12 = scmp.lt.s32.totalorder %s130_s28, %s130_s28 }
  0x18   : > { %p562_p7 = pneg %p814_p2  ;;  %p572_p8 = scmp.ne.s32.totalorder %s130_s28, %s571_s5 }
  0x19   : > { %p580_p11 = scmp.lt.s32.totalorder %s571_s5, %s571_s5 }
  0x1a   : > { %p574_p9 = pnand %p572_p8, %p562_p7 }
  0x1b   : > { %p581_p1 = por %p580_p11, %p579_p12 }
  0x1c   : > { %p575_p10 = pneg %p574_p9 }
  0x1e   : > { %p582_p4 = pnand %p581_p1, %p575_p10 }
  0x20   : > { %585 = shalt.err (!%p582_p4)
}
  0x21   : > { %s716_s6 = smov 64   ;;  %s717_s7 = smov 4  }
  0x22   : > { %498 = dma.hbm_to_vmem [thread:$0]  (!%p814_p2), %s954_s0, 128, %s130_s28, [#allocation3], %s716_s6, %s716_s6, %s717_s7  }
  0x23   : > { %p834_p8 = pnand %p512_p3, %p785_p5  ;;  %s597_s11 = scalar_lea.vmem %s143_s4, 128 }
  0x24   : > { %p598_p4 = scmp.ne.s32.totalorder %s143_s4, %s597_s11  ;;  %p605_p9 = scmp.lt.s32.totalorder %s143_s4, %s143_s4 }
  0x25   : > { %p606_p10 = scmp.lt.s32.totalorder %s597_s11, %s597_s11 }
  0x26   : > { %p600_p11 = pnand %p598_p4, %p562_p7 }
  0x27   : > { %p607_p1 = por %p606_p10, %p605_p9 }
  0x28   : > { %p601_p12 = pneg %p600_p11 }
  0x2a   : > { %p608_p0 = pnand %p607_p1, %p601_p12 }
  0x2c   : > { %611 = shalt.err (!%p608_p0)
}
  0x2d   : > { %501 = dma.hbm_to_vmem [thread:$0]  (!%p814_p2), %s955_s1, 128, %s143_s4, [#allocation6], %s716_s6, %s716_s6, %s717_s7  }
  0x2e   : > { %s156_s20 = sand.u32 1, %s712_s15   ;;  %s158_s22 = sand.u32 1, %s708_s14  }
  0x2f   : > { %s448_s27 = sshll.u32 %s158_s22, 4  ;;  %s465_s28 = sshll.u32 %s712_s15, 8 }
  0x30   : > { %s852_s8 = scalar_lea.hbm %s956_s2, %s465_s28  ;;  %s160_s29 = scalar_lea.vmem [#allocation7], %s448_s27 }
  0x31   : > { %s167_s9 = sshll.u32 %s160_s29, 4  ;;  %s856_s11 = scalar_lea.sflag [#allocation3], %s156_s20  ;;  %s854_s9 = int_to_ptr.vmem [resolvable:$true] %s167_s9 }
  0x32   : > { %s612_s17 = scalar_lea.hbm %s852_s8, 256  ;;  %p614_p2 = pneg %p834_p8 }
  0x33   : > { %p613_p5 = scmp.ne.s32.totalorder %s852_s8, %s612_s17  ;;  %s617_s7 = scalar_lea.hbm %s956_s2, 512 }
  0x34   : > { %p618_p7 = scmp.lt.s32.totalorder %s852_s8, %s956_s2  ;;  %p619_p4 = scmp.lt.s32.totalorder %s617_s7, %s612_s17 }
  0x35   : > { %p615_p0 = pnand %p614_p2, %p613_p5 }
  0x36   : > { %p620_p11 = por %p619_p4, %p618_p7 }
  0x37   : > { %p616_p3 = pneg %p615_p0 }
  0x39   : > { %p621_p12 = pnand %p620_p11, %p616_p3 }
  0x3b   : > { %624 = shalt.err (!%p621_p12)
}
  0x3c   : > { %s625_s20 = scalar_lea.vmem %s854_s9, 256  ;;  %s718_s27 = smov [#allocation7]  }
  0x3d   : > { %p626_p9 = scmp.ne.s32.totalorder %s854_s9, %s625_s20  ;;  %s630_s28 = sshll.u32 %s718_s27, 4  ;;  %s631_s28 = int_to_ptr.vmem [resolvable:$false] %s630_s28 }
  0x3e   : > { %s632_s30 = scalar_lea.vmem %s631_s28, 512  ;;  %p633_p5 = scmp.lt.s32.totalorder %s854_s9, %s631_s28 }
  0x3f   : > { %p628_p10 = pnand %p626_p9, %p614_p2  ;;  %p634_p0 = scmp.lt.s32.totalorder %s632_s30, %s625_s20 }
  0x41   : > { %p629_p1 = pneg %p628_p10  ;;  %p635_p6 = por %p634_p0, %p633_p5 }
  0x43   : > { %p636_p13 = pnand %p635_p6, %p629_p1 }
  0x45   : > { %639 = shalt.err (!%p636_p13)
}
  0x46   : > { %s719_s5 = smov 128   ;;  %s720_s29 = smov 8  }
  0x47   : > { %505 = dma.hbm_to_vmem [thread:$0]  (!%p834_p8), %s852_s8, 256, %s854_s9, %s856_s11, %s719_s5, %s719_s5, %s720_s29  }
  0x48   : > { %p969_p2 = scmp.ne.s32.totalorder %s966_s26, 0 }
  0x49   : > { %p970_p3 = scmp.eq.s32.totalorder (!%p969_p2), %s767_s16, 0 }
  0x4a   : > { %179 = sbr.rel (%p969_p2) target bundleno = 514 (0x202), region = 32 }
  0x4f   : > { %683 = dma.done.wait (%p970_p3), [#allocation3], 128   ;;  %p971_p7 = pmov %p970_p3 }
  0x50   : > { %p972_p6 = pmov %p970_p3 }
  0x51   : > { %685 = vsyncadd (%p971_p7), [#allocation3], 4294967168 }
  0x52   : > { %687 = dma.done.wait (%p972_p6), [#allocation6], 128   ;;  %p973_p13 = pmov %p970_p3 }
  0x53   : > { %s189_s10 = sand.u32 1, %s767_s16   ;;  %s191_s8 = sand.u32 1, %s704_s13  }
  0x54   : > { %689 = vsyncadd (%p973_p13), [#allocation6], 4294967168  ;;  %s891_s26 = sshll.u32 %s191_s8, 4  ;;  %s190_s9 = scalar_lea.sflag [#allocation3], %s189_s10 }
  0x55   : > { %s193_s11 = scalar_lea.vmem [#allocation7], %s891_s26  ;;  %p974_p8 = scmp.ne.s32.totalorder %s963_s23, 0 }
  0x57   : > { %691 = dma.done.wait (%p974_p8), %s190_s9, 256  }
  0x58   : > { %693 = vsyncadd (%p974_p8), %s190_s9, 4294967040  ;;  %v721_v0 = vmov 0.0   ;;  %vm722_vm0 = vmmov 0   ;;  %v217_v1 = vld [vmem:[%s193_s11] sm:$0xff]  ;;  %v218_v2 = vld [vmem:[%s193_s11 + $0x8] sm:$0xff]  ;;  %vm227_vm1 = vcmask 130048  }
  0x59   : > { %471 = vmatprep.subr.bf16.mxu0 %v721_v0  ;;  %473 = vmatprep.mubr.msk.bf16.mxu0 %vm722_vm0, %v721_v0  ;;  %v221_v3 = vpack.c.bf16 %v218_v2, %v217_v1  ;;  %v558_v4 = vld [vmem:[#allocation2] sm:$0xff]   ;;  %v559_v5 = vld [vmem:[#allocation5] sm:$0xff]   ;;  %s466_s23 = sshll.u32 %s767_s16, 8  ;;  %s215_s17 = scalar_lea.vmem [#allocation8], %s891_s26 }
  0x5a   : > { %477 = vmatprep.subr.bf16.mxu1 %v721_v0  ;;  %479 = vmatprep.mubr.msk.bf16.mxu1 %vm722_vm0, %v721_v0  ;;  %s351_s4 = sshll.u32 %s215_s17, 4  ;;  %s906_s19 = scalar_lea.hbm %s957_s3, %s466_s23  ;;  %s908_s4 = int_to_ptr.vmem [resolvable:$true] %s351_s4 }
  0x5b   : > { %472 = vmatpush3.bf16.msra.mxu0 %v221_v3  ;;  %478 = vmatpush3.bf16.msra.mxu1 %v559_v5  ;;  %s913_s16 = scalar_lea.sflag [#allocation4], %s191_s8  ;;  %s640_s22 = scalar_lea.vmem %s908_s4, 256 }
  0x5c   : > { %p641_p4 = scmp.ne.s32.totalorder %s908_s4, %s640_s22  ;;  %p975_p11 = scmp.ne.s32.totalorder %s964_s24, 0 }
  0x5d   : > { %s723_s20 = smov [#allocation8]  }
  0x5e   : > { %474 = vmatmul.mubr.msk.bf16.vlgmr.msra.gmra.mxu0 %vm227_vm1, %v558_v4  ;;  %p642_p12 = pnand %p641_p4, %p975_p11  ;;  %s644_s27 = sshll.u32 %s723_s20, 4  ;;  %s645_s27 = int_to_ptr.vmem [resolvable:$false] %s644_s27 }
  0x5f   : > { %s646_s28 = scalar_lea.vmem %s645_s27, 512  ;;  %p647_p10 = scmp.lt.s32.totalorder %s908_s4, %s645_s27 }
  0x60   : > { %p643_p9 = pneg %p642_p12  ;;  %p648_p1 = scmp.lt.s32.totalorder %s646_s28, %s640_s22 }
  0x62   : > { %p649_p5 = por %p648_p1, %p647_p10 }
  0x64   : > { %p650_p0 = pnand %p649_p5, %p643_p9 }
 0x11e   : > { %v265_v6 = vpop.f32.mrf.mxu0 }
 0x120   : > { %v475_v7 = vpop.f32.mrf.mxu0 }
 0x122   : > { %v268_v8 = vpop.f32.mrf.mxu0 }
 0x123   : > { %v272_v9 = vpack.c.bf16 %v268_v8, %v265_v6 }
 0x124   : > { %v476_v10 = vpop.f32.mrf.mxu0 }
 0x125   : > { %480 = vmatmul.mubr.msk.bf16.vlgmr.msra.gmra.mxu1 %vm227_vm1, %v272_v9 }
 0x1e5   : > { %v318_v11 = vpop.f32.mrf.mxu1 }
 0x1e6   : > { %v325_v12 = vmul.f32 0.0010405828, %v318_v11 }
 0x1e7   : > { %v481_v13 = vpop.f32.mrf.mxu1 }
 0x1e8   : > { %v327_v14 = vsub.f32 %v325_v12, %v217_v1 }
 0x1e9   : > { %v321_v15 = vpop.f32.mrf.mxu1 }
 0x1ea   : > { %v329_v16 = vand.u32 2147483647, %v327_v14  ;;  %v326_v17 = vmul.f32 0.0010405828, %v321_v15 }
 0x1eb   : > { %v482_v18 = vpop.f32.mrf.mxu1 }
 0x1ec   : > { %v331_v19 = vmul.f32 5.0, %v329_v16  ;;  %v328_v20 = vsub.f32 %v326_v17, %v218_v2 }
 0x1ee   : > { %v333_v21 = vadd.f32 1.0, %v331_v19  ;;  %v330_v22 = vand.u32 2147483647, %v328_v20 }
 0x1f0   : > { %335 = vst.msk [vmem:[%s215_s17] sm:$0xff] %vm227_vm1, %v333_v21  ;;  %v332_v23 = vmul.f32 5.0, %v330_v22 }
 0x1f2   : > { %v334_v24 = vadd.f32 1.0, %v332_v23 }
 0x1f4   : > { %336 = vst.msk [vmem:[%s215_s17 + $0x8] sm:$0xff] %vm227_vm1, %v334_v24 }
 0x1f5   : > { %653 = shalt.err (!%p650_p0)
}
 0x1f6   : > { %s654_s30 = scalar_lea.hbm %s906_s19, 256  ;;  %s658_s10 = scalar_lea.hbm %s957_s3, 512 }
 0x1f7   : > { %p655_p2 = scmp.ne.s32.totalorder %s906_s19, %s654_s30  ;;  %p659_p6 = scmp.lt.s32.totalorder %s906_s19, %s957_s3 }
 0x1f8   : > { %p660_p13 = scmp.lt.s32.totalorder %s658_s10, %s654_s30 }
 0x1f9   : > { %p656_p3 = pnand %p655_p2, %p975_p11 }
 0x1fa   : > { %p661_p8 = por %p660_p13, %p659_p6 }
 0x1fb   : > { %p657_p7 = pneg %p656_p3 }
 0x1fd   : > { %p662_p4 = pnand %p661_p8, %p657_p7 }
 0x1ff   : > { %665 = shalt.err (!%p662_p4)
}
 0x200   : > { %s724_s9 = smov 128   ;;  %s725_s11 = smov 8  }
 0x201   : > { %493 = dma.vmem_to_hbm [thread:$0]  (%p975_p11), %s908_s4, 256, %s906_s19, %s913_s16, %s724_s9, %s724_s9, %s725_s11  }
 0x202 PF: > { %s366_s23 = sand.u32 1, %s700_s12   ;;  %p976_p12 = scmp.ne.s32.totalorder %s965_s25, 0 }
 0x203   : > { %p977_p9 = scmp.ge.s32.totalorder %s712_s15, 2  ;;  %s367_s17 = scalar_lea.sflag [#allocation4], %s366_s23 }
 0x205   : > { %p507_p10 = pnand %p977_p9, %p976_p12 }
 0x207   : > { %p508_p1 = pneg %p507_p10 }
 0x209   : > { %695 = dma.done.wait (%p508_p1), %s367_s17, 256  }
 0x20a   : > { %697 = vsyncadd (%p508_p1), %s367_s17, 4294967040  ;;  %p15_p5 = scmp.ge.s32.totalorder %s771_s18, 4   ;;  %s978_s12 = smov %s704_s13 }
 0x20b   : > { %s979_s13 = smov %s708_s14  ;;  %s980_s14 = smov %s783_s21 }
 0x20c   : > { %s981_s15 = smov %s771_s18  ;;  %17 = sbr.rel (!%p15_p5) target bundleno = 5 (0x5), region = 84 }
 0x211   :  { %372 = vsyncpa [#allocation3], 1 }
 0x212   :  { %374 = vsyncpa [#allocation3 + $0x1], 1 }
 0x213   :  { %375 = vsyncpa [#allocation6], 1 }
 0x214   :  { %376 = vsyncpa [#allocation4], 1 }
 0x215   :  { %378 = vsyncpa [#allocation4 + $0x1], 1 }

</bundles_post_ra>
